<compile_context>
chip_gen: v7x
topology: tpu7x:2x2x1
jax: 0.10.0
libtpu: 0.0.40
codegen_flags: <defaults>
</compile_context>

<pallas_src>
import jax
import jax.numpy as jnp
from jax.experimental import pallas as pl
from jax.experimental.pallas import tpu as pltpu


def _sobel_kernel(x_ref, top_ref, bot_ref, o_ref):
    """x_ref: (bc, th, W) image block; top/bot_ref: (bc, 1, 1, W) halo rows."""
    bc, th, w = x_ref.shape
    f32 = jnp.float32

    x = x_ref[...].astype(f32)                       # (bc, th, w)
    top = top_ref[...].reshape(bc, 1, w).astype(f32)  # row above the block (or zeros)
    bot = bot_ref[...].reshape(bc, 1, w).astype(f32)  # row below the block (or zeros)

    # Rows with a 1-row halo on each side (the conv's padding=1 along H).
    xr = jnp.concatenate([top, x, bot], axis=1)       # (bc, th+2, w)
    r_up = xr[:, 0:th, :]
    r_mid = xr[:, 1:th + 1, :]
    r_dn = xr[:, 2:th + 2, :]

    # Separable Sobel: vertical smoothing feeds Gx, vertical difference feeds Gy.
    vs = (r_up + r_dn) + 2.0 * r_mid                  # (bc, th, w)
    vd = r_up - r_dn                                  # (bc, th, w)

    # 1-column zero padding on each side (the conv's padding=1 along W).
    zc = jnp.zeros((bc, th, 1), f32)
    vsp = jnp.concatenate([zc, vs, zc], axis=2)       # (bc, th, w+2)
    vdp = jnp.concatenate([zc, vd, zc], axis=2)

    gx = vsp[:, :, 0:w] - vsp[:, :, 2:w + 2]
    gy = (vdp[:, :, 0:w] + vdp[:, :, 2:w + 2]) + 2.0 * vdp[:, :, 1:w + 1]

    o_ref[...] = (jnp.abs(gx) + jnp.abs(gy)).astype(o_ref.dtype)


def _choose_blocks(nc, h, w, itemsize, vmem_budget_bytes):
    """Pick (block_nc, block_h) targeting ~vmem_budget_bytes of resident tiles."""

    def cost(bc, th):
        io = 2 * bc * th * w * 2 * itemsize          # in + out blocks, double-buffered
        halo = 2 * bc * 2 * w * itemsize             # top/bot halo rows, double-buffered
        tmp = 5 * bc * (th + 2) * (w + 2) * 4        # f32 kernel temporaries
        return io + halo + tmp

    # th: prefer the full height; otherwise the largest divisor of h that is a
    # multiple of 8 (sublane-aligned block dim) and fits the budget.
    th = h
    if cost(1, h) > vmem_budget_bytes:
        cands = [d for d in range(8, h, 8) if h % d == 0]
        for d in sorted(cands, reverse=True):
            if cost(1, d) <= vmem_budget_bytes:
                th = d
                break
        else:
            th = min(cands) if cands else h

    bc = int(max(1, min(nc, vmem_budget_bytes // max(cost(1, th), 1))))

    # Keep >= 2 grid steps when possible so megacore (v7x: 2 TCs) can split work.
    if bc >= nc and (h // th) < 2 and nc >= 2:
        bc = (nc + 1) // 2
    return bc, th


def sobel_dw_forward(x, *, block_nc=None, block_h=None,
                     vmem_budget_bytes=12 * 1024 * 1024):
    """JAX/Pallas equivalent of Sobel_dw.forward on NCHW input."""
    n, c, h, w = x.shape
    nc = n * c
    x3 = x.reshape(nc, h, w)

    bc, th = _choose_blocks(nc, h, w, x.dtype.itemsize, vmem_budget_bytes)
    if block_nc is not None:
        bc = int(block_nc)
    if block_h is not None:
        th = int(block_h)
    assert h % th == 0, "block_h must divide H (row-halo bookkeeping)"
    n_hb = h // th
    n_cb = pl.cdiv(nc, bc)

    # Per-H-block halo rows: entry j of `top` is the image row just above block j
    # (zeros for j=0); entry j of `bot` is the row just below (zeros for the last
    # block).  This is ~2/th of the input — no full padded copy in HBM.
    zero_row = jnp.zeros((nc, 1, 1, w), x.dtype)
    if n_hb > 1:
        inner_top = x3[:, th - 1:h - 1:th, :].reshape(nc, n_hb - 1, 1, w)
        inner_bot = x3[:, th:h:th, :].reshape(nc, n_hb - 1, 1, w)
        top = jnp.concatenate([zero_row, inner_top], axis=1)
        bot = jnp.concatenate([inner_bot, zero_row], axis=1)
    else:
        top = zero_row
        bot = zero_row

    out3 = pl.pallas_call(
        _sobel_kernel,
        out_shape=jax.ShapeDtypeStruct((nc, h, w), x.dtype),
        grid=(n_cb, n_hb),
        in_specs=[
            pl.BlockSpec((bc, th, w), lambda i, j: (i, j, 0)),
            pl.BlockSpec((bc, 1, 1, w), lambda i, j: (i, j, 0, 0)),
            pl.BlockSpec((bc, 1, 1, w), lambda i, j: (i, j, 0, 0)),
        ],
        out_specs=pl.BlockSpec((bc, th, w), lambda i, j: (i, j, 0)),
        compiler_params=pltpu.CompilerParams(
            dimension_semantics=("parallel", "parallel"),
            vmem_limit_bytes=48 * 1024 * 1024,
        ),
    )(x3, top, bot)

    return out3.reshape(n, c, h, w)


class Sobel_dw:
    """JAX/Pallas port of the PyTorch Sobel_dw module.

    The Sobel filters are fixed (non-trainable) constants, so they are baked
    into the kernel as shift-and-add arithmetic rather than stored as weights.
    """

    def __init__(self, in_channels):
        self.in_channels = in_channels
        self._fwd = jax.jit(sobel_dw_forward)

    def __call__(self, x):
        return self._fwd(x)


def _sobel_ref(x):
    """Pure-JAX reference (depthwise conv) for correctness checking."""
    n, c, h, w = x.shape
    kx = jnp.array([[1, 0, -1], [2, 0, -2], [1, 0, -1]], jnp.float32)
    ky = jnp.array([[1, 2, 1], [0, 0, 0], [-1, -2, -1]], jnp.float32)
    wx = jnp.broadcast_to(kx, (c, 1, 3, 3)).astype(x.dtype)
    wy = jnp.broadcast_to(ky, (c, 1, 3, 3)).astype(x.dtype)
    conv = lambda inp, wt: jax.lax.conv_general_dilated(
        inp, wt, (1, 1), "SAME",
        dimension_numbers=("NCHW", "OIHW", "NCHW"),
        feature_group_count=c,
        precision=jax.lax.Precision.HIGHEST,
    )
    return jnp.abs(conv(x, wx)) + jnp.abs(conv(x, wy))


if __name__ == "__main__":
    key = jax.random.PRNGKey(0)
    # The PyTorch module hard-codes a 3-channel depthwise conv.
    x = jax.random.normal(key, (2, 3, 16, 16), dtype=jnp.float32)

    model = Sobel_dw(in_channels=3)
    y = jax.block_until_ready(model(x))
    y_ref = jax.block_until_ready(_sobel_ref(x))

    assert y.shape == x.shape and y.dtype == x.dtype
    assert bool(jnp.allclose(y, y_ref, atol=1e-4, rtol=1e-4))

    # Also exercise the spatially tiled path: H grid axis with row halos and a
    # non-divisible NC block (pl.cdiv remainder masking).
    y_tiled = jax.block_until_ready(sobel_dw_forward(x, block_nc=4, block_h=8))
    assert bool(jnp.allclose(y_tiled, y_ref, atol=1e-4, rtol=1e-4))

    print("KERNEL_OK")
</pallas_src>

<mosaic_0001>
module attributes {stable_mosaic.version = 11 : i64} {
  func.func @_sobel_kernel(%arg0: i32, %arg1: i32, %arg2: memref<3x16x16xf32, #tpu.memory_space<vmem>>, %arg3: memref<3x1x1x16xf32, #tpu.memory_space<vmem>>, %arg4: memref<3x1x1x16xf32, #tpu.memory_space<vmem>>, %arg5: memref<3x16x16xf32, #tpu.memory_space<vmem>>) attributes {dimension_semantics = [#tpu.dimension_semantics<parallel>, #tpu.dimension_semantics<parallel>], iteration_bounds = array<i64: 2, 1>, scalar_prefetch = 0 : i64, scratch_operands = 0 : i64, tpu.core_type = #tpu.core_type<tc>, window_params = [{transform_indices = @transform_0, window_bounds = array<i64: 3, 16, 16>}, {transform_indices = @transform_1, window_bounds = array<i64: 3, 1, 1, 16>}, {transform_indices = @transform_2, window_bounds = array<i64: 3, 1, 1, 16>}, {transform_indices = @transform_3, window_bounds = array<i64: 3, 16, 16>}]} {
    %c0 = arith.constant 0 : index
    %c0_0 = arith.constant 0 : index
    %c0_1 = arith.constant 0 : index
    %0 = vector.load %arg2[%c0, %c0_0, %c0_1] : memref<3x16x16xf32, #tpu.memory_space<vmem>>, vector<3x16x16xf32>
    %c0_2 = arith.constant 0 : index
    %c0_3 = arith.constant 0 : index
    %c0_4 = arith.constant 0 : index
    %c0_5 = arith.constant 0 : index
    %1 = vector.load %arg3[%c0_2, %c0_3, %c0_4, %c0_5] : memref<3x1x1x16xf32, #tpu.memory_space<vmem>>, vector<3x1x1x16xf32>
    %2 = vector.shape_cast %1 : vector<3x1x1x16xf32> to vector<3x1x16xf32>
    %c0_6 = arith.constant 0 : index
    %c0_7 = arith.constant 0 : index
    %c0_8 = arith.constant 0 : index
    %c0_9 = arith.constant 0 : index
    %3 = vector.load %arg4[%c0_6, %c0_7, %c0_8, %c0_9] : memref<3x1x1x16xf32, #tpu.memory_space<vmem>>, vector<3x1x1x16xf32>
    %4 = vector.shape_cast %3 : vector<3x1x1x16xf32> to vector<3x1x16xf32>
    %5 = tpu.concatenate %2, %0, %4 in 1 : vector<3x1x16xf32>, vector<3x16x16xf32>, vector<3x1x16xf32> -> vector<3x18x16xf32>
    %6 = vector.extract_strided_slice %5 {offsets = [0, 0, 0], sizes = [3, 16, 16], strides = [1, 1, 1]} : vector<3x18x16xf32> to vector<3x16x16xf32>
    %7 = vector.extract_strided_slice %5 {offsets = [0, 1, 0], sizes = [3, 16, 16], strides = [1, 1, 1]} : vector<3x18x16xf32> to vector<3x16x16xf32>
    %8 = vector.extract_strided_slice %5 {offsets = [0, 2, 0], sizes = [3, 16, 16], strides = [1, 1, 1]} : vector<3x18x16xf32> to vector<3x16x16xf32>
    %9 = arith.addf %6, %8 : vector<3x16x16xf32>
    %cst = arith.constant 2.000000e+00 : f32
    %10 = vector.broadcast %cst : f32 to vector<3x16x16xf32>
    %11 = arith.mulf %10, %7 : vector<3x16x16xf32>
    %12 = arith.addf %9, %11 : vector<3x16x16xf32>
    %13 = arith.subf %6, %8 : vector<3x16x16xf32>
    %cst_10 = arith.constant 0.000000e+00 : f32
    %14 = vector.broadcast %cst_10 : f32 to vector<3x16x1xf32>
    %15 = tpu.concatenate %14, %12, %14 in 2 : vector<3x16x1xf32>, vector<3x16x16xf32>, vector<3x16x1xf32> -> vector<3x16x18xf32>
    %16 = tpu.concatenate %14, %13, %14 in 2 : vector<3x16x1xf32>, vector<3x16x16xf32>, vector<3x16x1xf32> -> vector<3x16x18xf32>
    %17 = vector.extract_strided_slice %15 {offsets = [0, 0, 0], sizes = [3, 16, 16], strides = [1, 1, 1]} : vector<3x16x18xf32> to vector<3x16x16xf32>
    %18 = vector.extract_strided_slice %15 {offsets = [0, 0, 2], sizes = [3, 16, 16], strides = [1, 1, 1]} : vector<3x16x18xf32> to vector<3x16x16xf32>
    %19 = arith.subf %17, %18 : vector<3x16x16xf32>
    %20 = vector.extract_strided_slice %16 {offsets = [0, 0, 0], sizes = [3, 16, 16], strides = [1, 1, 1]} : vector<3x16x18xf32> to vector<3x16x16xf32>
    %21 = vector.extract_strided_slice %16 {offsets = [0, 0, 2], sizes = [3, 16, 16], strides = [1, 1, 1]} : vector<3x16x18xf32> to vector<3x16x16xf32>
    %22 = arith.addf %20, %21 : vector<3x16x16xf32>
    %23 = vector.extract_strided_slice %16 {offsets = [0, 0, 1], sizes = [3, 16, 16], strides = [1, 1, 1]} : vector<3x16x18xf32> to vector<3x16x16xf32>
    %cst_11 = arith.constant 2.000000e+00 : f32
    %24 = vector.broadcast %cst_11 : f32 to vector<3x16x16xf32>
    %25 = arith.mulf %24, %23 : vector<3x16x16xf32>
    %26 = arith.addf %22, %25 : vector<3x16x16xf32>
    %27 = math.absf %19 : vector<3x16x16xf32>
    %28 = math.absf %26 : vector<3x16x16xf32>
    %29 = arith.addf %27, %28 : vector<3x16x16xf32>
    %c0_12 = arith.constant 0 : index
    %c0_13 = arith.constant 0 : index
    %c0_14 = arith.constant 0 : index
    %30 = vector.load %arg5[%c0_12, %c0_13, %c0_14] : memref<3x16x16xf32, #tpu.memory_space<vmem>>, vector<3x16x16xf32>
    tpu.vector_store %arg5[%c0_12, %c0_13, %c0_14], %29 {strides = array<i32>} : memref<3x16x16xf32, #tpu.memory_space<vmem>>, vector<3x16x16xf32>,
    return
  }
  func.func @transform_0(%arg0: i32, %arg1: i32) -> (i32, i32, i32) {
    %c0_i32 = arith.constant 0 : i32
    %c0_i32_0 = arith.constant 0 : i32
    return %arg0, %arg1, %c0_i32 : i32, i32, i32
  }
  func.func @transform_1(%arg0: i32, %arg1: i32) -> (i32, i32, i32, i32) {
    %c0_i32 = arith.constant 0 : i32
    %c0_i32_0 = arith.constant 0 : i32
    %c0_i32_1 = arith.constant 0 : i32
    return %arg0, %arg1, %c0_i32, %c0_i32_0 : i32, i32, i32, i32
  }
  func.func @transform_2(%arg0: i32, %arg1: i32) -> (i32, i32, i32, i32) {
    %c0_i32 = arith.constant 0 : i32
    %c0_i32_0 = arith.constant 0 : i32
    %c0_i32_1 = arith.constant 0 : i32
    return %arg0, %arg1, %c0_i32, %c0_i32_0 : i32, i32, i32, i32
  }
  func.func @transform_3(%arg0: i32, %arg1: i32) -> (i32, i32, i32) {
    %c0_i32 = arith.constant 0 : i32
    %c0_i32_0 = arith.constant 0 : i32
    return %arg0, %arg1, %c0_i32 : i32, i32, i32
  }
}

</mosaic_0001>

<bundles_post_ra>
// kernel: sobel_dw_forward.1
= control target key start
LH: loop header
LB: loop body
LE: loop exit
PB: predicated region body
PF: predicated region fallthrough
CT: control target
= control target key end

     0   :  { %8 = vsyncpa [#allocation3], 0  ;;  %s1312_s0 = inlined_call_operand.hbm [shape: f32[6,16,16], index: 0, kind: input, shape index: {}]   ;;  %s1313_s1 = inlined_call_operand.vmem [shape: f32[6,1,1,16], index: 1, kind: input, shape index: {}, may-alias: {1,2}]   ;;  %s1314_s2 = inlined_call_operand.vmem [shape: f32[6,1,1,16], index: 2, kind: input, shape index: {}, may-alias: {1,2}]   ;;  %s1315_s3 = inlined_call_operand.hbm [shape: f32[6,16,16], index: 3, kind: output, shape index: {}]  }
   0x1   :  { %10 = vsyncpa [#allocation3 + $0x1], 0 }
   0x2   :  { %11 = vsyncpa [#allocation4], 0 }
   0x3   :  { %13 = vsyncpa [#allocation4 + $0x1], 0  ;;  %s976_s12 = smov 0   ;;  %s978_s13 = smov 0  }
   0x4   :  { %s980_s14 = smov 0   ;;  %s982_s15 = smov 0  }
   0x5   :  { %s984_s16 = smov 0   ;;  %s986_s17 = smov 0  }
   0x6 LB: > { %s742_s18 = sadd.s32 4294967295, %s945_s17   ;;  %s743_s19 = sadd.s32 4294967294, %s945_s17   ;;  %s945_s17 = sphi %s986_s17, %s19_s17   ;;  %s941_s16 = sphi %s984_s16, %s1330_s16   ;;  %s937_s15 = sphi %s982_s15, %s1329_s15   ;;  %s933_s14 = sphi %s980_s14, %s1328_s14   ;;  %s929_s13 = sphi %s978_s13, %s1327_s13   ;;  %s925_s12 = sphi %s976_s12, %s1326_s12  }
   0x7   : > { %s31_s20 = sadd.s32 1, %s941_s16  ;;  %s40_s21 = sadd.s32 1, %s933_s14 }
   0x8   : > { %p33_p0 = scmp.ge.s32.totalorder %s31_s20, 2  ;;  %p47_p1 = scmp.ne.s32.totalorder %s933_s14, %s929_s13 }
   0x9   : > { %p48_p2 = scmp.eq.s32.totalorder %s945_s17, 0  ;;  %p53_p3 = scmp.ne.s32.totalorder %s929_s13, %s925_s12 }
   0xa   : > { %s1332_s20 = smov (%p33_p0, %s31_s20), 0  ;;  %p54_p5 = scmp.eq.s32.totalorder %s742_s18, 0 }
   0xb   : > { %p1017_p4 = por %p48_p2, %p47_p1  ;;  %s35_s23 = ssub.s32 %s941_s16, %s1332_s20 }
   0xc   : > { %p135_p6 = scmp.eq.s32.totalorder %s742_s18, 1  ;;  %p38_p7 = scmp.eq.s32.totalorder %s35_s23, 0 }
   0xd   : > { %p1023_p8 = por %p54_p5, %p53_p3  ;;  %p141_p10 = scmp.eq.s32.totalorder %s743_s19, 1 }
   0xe   : > { %p1027_p9 = por %p135_p6, %p47_p1  ;;  %p776_p13 = scmp.lt.s32.totalorder %s945_s17, 2 }
   0xf   : > { %s1032_s26 = scalar_select %p38_p7, %s933_s14, %s40_s21  }
  0x10   : > { %s1319_s25 = scalar_select %p1027_p9, 1, 0 }
  0x11   : > { %p1034_p11 = por %p141_p10, %p53_p3  ;;  %s161_s28 = sand.u32 1, %s933_s14  }
  0x12   : > { %s762_s29 = smul.u32 48, %s161_s28  ;;  %p1044_p0 = pnand %p776_p13, %p1017_p4 }
  0x13   : > { %s1320_s27 = scalar_select %p1034_p11, 1, 0 }
  0x14   : > { %s760_s30 = smul.u32 768, %s941_s16  ;;  %s165_s8 = scalar_lea.vmem [#allocation2], %s762_s29 }
  0x15   : > { %s175_s9 = sshll.u32 %s165_s8, 4  ;;  %s1056_s10 = scalar_lea.sflag [#allocation3], %s161_s28  ;;  %s1053_s9 = int_to_ptr.vmem [resolvable:$true] %s175_s9 }
  0x16   : > { %s1051_s7 = scalar_lea.hbm %s1312_s0, %s760_s30  ;;  %p835_p3 = pneg %p1044_p0 }
  0x17   : > { %s833_s11 = scalar_lea.hbm %s1051_s7, 768  ;;  %s838_s21 = scalar_lea.hbm %s1312_s0, 1536 }
  0x18   : > { %p834_p2 = scmp.ne.s32.totalorder %s1051_s7, %s833_s11  ;;  %p839_p6 = scmp.lt.u32.totalorder %s1051_s7, %s1312_s0 }
  0x19   : > { %p840_p7 = scmp.lt.u32.totalorder %s838_s21, %s833_s11  ;;  %p842_p13 = scmp.lt.u32.totalorder %s833_s11, %s1051_s7 }
  0x1a   : > { %p836_p4 = pnand %p835_p3, %p834_p2 }
  0x1b   : > { %p841_p10 = por %p840_p7, %p839_p6 }
  0x1c   : > { %p837_p5 = pneg %p836_p4 }
  0x1d   : > { %p843_p12 = por %p842_p13, %p841_p10 }
  0x1f   : > { %p844_p1 = pnand %p843_p12, %p837_p5 }
  0x21   : > { %847 = shalt.err (!%p844_p1)
}
  0x22   : > { %s848_s28 = scalar_lea.vmem %s1053_s9, 768  ;;  %s947_s29 = smov [#allocation2]  }
  0x23   : > { %p849_p2 = scmp.ne.s32.totalorder %s1053_s9, %s848_s28  ;;  %s853_s30 = sshll.u32 %s947_s29, 4  ;;  %s854_s30 = int_to_ptr.vmem [resolvable:$false] %s853_s30 }
  0x24   : > { %s855_s5 = scalar_lea.vmem %s854_s30, 1536  ;;  %p856_p9 = scmp.lt.s32.totalorder %s1053_s9, %s854_s30 }
  0x25   : > { %p851_p4 = pnand %p849_p2, %p835_p3  ;;  %p857_p6 = scmp.lt.s32.totalorder %s855_s5, %s848_s28 }
  0x27   : > { %p852_p11 = pneg %p851_p4  ;;  %p858_p7 = por %p857_p6, %p856_p9 }
  0x29   : > { %p859_p10 = pnand %p858_p7, %p852_p11 }
  0x2b   : > { %862 = shalt.err (!%p859_p10)
}
  0x2c   : > { %s948_s6 = smov 128   ;;  %s949_s8 = smov 8  }
  0x2d   : > { %771 = dma.hbm_to_vmem [thread:$0]  (!%p1044_p0), %s1051_s7, 768, %s1053_s9, %s1056_s10, %s948_s6, %s948_s6, %s949_s8  }
  0x2e   : > { %p205_p12 = scmp.lt.s32.totalorder %s945_s17, 3  ;;  %p1322_p1 = scmp.ge.s32.totalorder %s945_s17, 1 }
  0x30   : > { %p206_p3 = pnand %p1322_p1, %p205_p12 }
  0x31   : > { %s1088_s11 = sand.u32 (!%p206_p3), 1, %s929_s13  }
  0x32   : > { %209 = sbr.rel (%p206_p3) target bundleno = 360 (0x168), region = 32  ;;  %s212_s19 = scalar_lea.sflag (!%p206_p3), [#allocation3], %s1088_s11 }
  0x33   : > { %s763_s18 = smul.u32 (!%p206_p3), 48, %s1088_s11 }
  0x35   : > { %s1094_s21 = scalar_lea.vmem (!%p206_p3), [#allocation2], %s763_s18 }
  0x39   : > { %916 = dma.done.wait (%p1023_p8), %s212_s19, 768  }
  0x3a   : > { %918 = vsyncadd (%p1023_p8), %s212_s19, 4294966528  ;;  %s254_s4 = smul.u32 3, %s937_s15  ;;  %v272_v0 = vld [vmem:[%s1094_s21] sm:$0xff]  ;;  %v273_v1 = vld [vmem:[%s1094_s21 + $0x8] sm:$0xff]  ;;  %vm290_vm0 = vcmask 1040384   ;;  %vm339_vm1 = vcmask 1045504  }
  0x3b   : > { %v291_v3 = vrot.slane %v272_v0, 7  ;;  %v292_v4 = vrot.slane %v273_v1, 7  ;;  %v274_v5 = vld [vmem:[%s1094_s21 + $0x10] sm:$0xff]  ;;  %v275_v6 = vld [vmem:[%s1094_s21 + $0x18] sm:$0xff]  ;;  %v276_v18 = vld [vmem:[%s1094_s21 + $0x20] sm:$0xff]  ;;  %vm385_vm2 = vcmask 1046528  }
  0x3c   : > { %p255_p9 = scmp.lt.s32.totalorder %s254_s4, 5  ;;  %v294_v8 = vrot.slane %v274_v5, 7  ;;  %v295_v9 = vrot.slane %v275_v6, 7  ;;  %v277_v23 = vld [vmem:[%s1094_s21 + $0x28] sm:$0xff]  ;;  %v297_v31 = vrot.slane %v276_v18, 7  ;;  %s950_s28 = smov 1  }
  0x3d   : > { %v293_v12 = vsel %vm290_vm0, %v291_v3, %v292_v4  ;;  %v298_v35 = vrot.slane %v277_v23, 7  ;;  %vm443_vm3 = vcmask 7168   ;;  %vm450_vm4 = vcmask 138240   ;;  %s951_s29 = smov 126   ;;  %s952_s30 = smov 127  }
  0x3e   : > { %s1334_s4 = smov (!%p255_p9, %s254_s4), 5  ;;  %v341_v16 = vrot.slane %v293_v12, 2  ;;  %v1123_v17 = vsel %vm290_vm0, %v294_v8, %v295_v9  ;;  %v368_v43 = vmul.f32 2.0, %v293_v12  ;;  %vm607_vm5 = vcmask 130048   ;;  %s1240_s5 = scalar_lea.vmem [#allocation5], %s763_s18 }
  0x3f   : > { %s1104_s10 = scalar_lea.vmem %s1313_s1, %s1334_s4  ;;  %s1109_s24 = scalar_lea.vmem %s1314_s2, %s1334_s4  ;;  %v346_v20 = vrot.slane %v1123_v17, 2  ;;  %v299_v40 = vsel %vm290_vm0, %v297_v31, %v298_v35  ;;  %v371_v50 = vmul.f32 2.0, %v1123_v17 }
  0x40   : > { %v278_v2 = vld [vmem:[%s1104_s10] sm:$0x1]  ;;  %v279_v7 = vld [vmem:[%s1104_s10 + $0x1] sm:$0x1]  ;;  %v280_v27 = vld [vmem:[%s1104_s10 + $0x2] sm:$0x1] }
  0x41   : > { %v749_v10 = vld [vmem:[%s1109_s24] ss:$0 sm:$0xff]  ;;  %v750_v11 = vld [vmem:[%s1109_s24 + $0x1] ss:$0 sm:$0xff]  ;;  %v327_v13 = vsel %vm290_vm0, %v278_v2, %v291_v3  ;;  %v328_v19 = vsel %vm290_vm0, %v279_v7, %v294_v8  ;;  %v751_v32 = vld [vmem:[%s1109_s24 + $0x2] ss:$0 sm:$0xff]  ;;  %v329_v39 = vsel %vm290_vm0, %v280_v27, %v297_v31 }
  0x42   : > { %v330_v14 = vsel %vm290_vm0, %v292_v4, %v749_v10  ;;  %v340_v15 = vrot.slane %v327_v13, 2  ;;  %v331_v22 = vsel %vm290_vm0, %v295_v9, %v750_v11  ;;  %v345_v25 = vrot.slane %v328_v19, 2  ;;  %s761_s6 = smul.u32 768, %s937_s15  ;;  %s631_s8 = sshll.u32 %s1240_s5, 4  ;;  %s1261_s8 = int_to_ptr.vmem [resolvable:$true] %s631_s8 }
  0x43   : > { %v343_v21 = vrot.slane %v330_v14, 2  ;;  %v348_v26 = vrot.slane %v331_v22, 2  ;;  %v367_v28 = vmul.f32 2.0, %v327_v13  ;;  %v370_v36 = vmul.f32 2.0, %v328_v19  ;;  %s615_s15 = scalar_lea.sflag [#allocation4], %s1088_s11  ;;  %s863_s4 = scalar_lea.vmem %s1261_s8, 768 }
  0x44   : > { %v342_v24 = vsel %vm339_vm1, %v340_v15, %v341_v16  ;;  %v347_v33 = vsel %vm339_vm1, %v345_v25, %v346_v20  ;;  %v350_v41 = vrot.slane %v329_v39, 2  ;;  %v332_v42 = vsel %vm290_vm0, %v298_v35, %v751_v32  ;;  %s1259_s21 = scalar_lea.hbm %s1315_s3, %s761_s6  ;;  %p864_p8 = scmp.ne.s32.totalorder %s1261_s8, %s863_s4 }
  0x45   : > { %v413_v29 = vsub.f32 %v327_v13, %v342_v24  ;;  %v344_v30 = vsel %vm339_vm1, %v341_v16, %v343_v21  ;;  %v349_v34 = vsel %vm339_vm1, %v346_v20, %v348_v26  ;;  %v415_v37 = vsub.f32 %v328_v19, %v347_v33  ;;  %p1323_p11 = scmp.ne.s32.totalorder %s1319_s25, 0  ;;  %s953_s7 = smov [#allocation5]  }
  0x46   : > { %v414_v38 = vsub.f32 %v293_v12, %v344_v30  ;;  %v416_v44 = vsub.f32 %v1123_v17, %v349_v34  ;;  %v351_v45 = vrot.slane %v299_v40, 2  ;;  %v353_v46 = vrot.slane %v332_v42, 2  ;;  %s867_s9 = sshll.u32 %s953_s7, 4  ;;  %s868_s9 = int_to_ptr.vmem [resolvable:$false] %s867_s9 }
  0x47   : > { %463 = vrot.lane.b32.xlu0 %v413_v29, %s950_s28  ;;  %467 = vrot.lane.b32.xlu1 %v415_v37, %s950_s28  ;;  %v386_v47 = vrot.slane %v367_v28, 1  ;;  %v387_v48 = vrot.slane %v368_v43, 1  ;;  %v369_v49 = vmul.f32 2.0, %v330_v14  ;;  %v361_v51 = vadd.f32 %v342_v24, %v327_v13  ;;  %p865_p0 = pnand %p864_p8, %p1323_p11  ;;  %s869_s10 = scalar_lea.vmem %s868_s9, 1536 }
  0x48   : > { %v352_v52 = vsel %vm339_vm1, %v350_v41, %v351_v45  ;;  %v354_v53 = vsel %vm339_vm1, %v351_v45, %v353_v46  ;;  %v372_v54 = vmul.f32 2.0, %v331_v22  ;;  %v391_v58 = vrot.slane %v370_v36, 1  ;;  %p870_p13 = scmp.lt.s32.totalorder %s1261_s8, %s868_s9  ;;  %p871_p2 = scmp.lt.s32.totalorder %s869_s10, %s863_s4 }
  0x49   : > { %v417_v55 = vsub.f32 %v329_v39, %v352_v52  ;;  %v388_v56 = vsel %vm385_vm2, %v386_v47, %v387_v48  ;;  %v389_v57 = vrot.slane %v369_v49, 1  ;;  %v418_v59 = vsub.f32 %v299_v40, %v354_v53  ;;  %p866_p5 = pneg %p865_p0 }
  0x4a   : > { %v362_v60 = vadd.f32 %v344_v30, %v293_v12  ;;  %v392_v61 = vrot.slane %v371_v50, 1  ;;  %v394_v63 = vrot.slane %v372_v54, 1  ;;  %v373_v0 = vmul.f32 2.0, %v329_v39  ;;  %p872_p4 = por %p871_p2, %p870_p13 }
  0x4b   : > { %465 = vrot.lane.b32.xlu0 %v414_v38, %s950_s28  ;;  %469 = vrot.lane.b32.xlu1 %v416_v44, %s950_s28  ;;  %v390_v62 = vsel %vm385_vm2, %v387_v48, %v389_v57  ;;  %v374_v1 = vmul.f32 2.0, %v299_v40  ;;  %v363_v2 = vadd.f32 %v347_v33, %v328_v19  ;;  %v407_v3 = vadd.f32 %v388_v56, %v361_v51 }
  0x4c   : > { %v375_v4 = vmul.f32 2.0, %v332_v42  ;;  %v393_v5 = vsel %vm385_vm2, %v391_v58, %v392_v61  ;;  %v396_v6 = vrot.slane %v373_v0, 1  ;;  %v408_v8 = vadd.f32 %v390_v62, %v362_v60  ;;  %p873_p6 = pnand %p872_p4, %p866_p5 }
  0x4d   : > { %v397_v7 = vrot.slane %v374_v1, 1  ;;  %v364_v9 = vadd.f32 %v349_v34, %v1123_v17  ;;  %v395_v10 = vsel %vm385_vm2, %v392_v61, %v394_v63  ;;  %v409_v12 = vadd.f32 %v393_v5, %v363_v2 }
  0x4e   : > { %v399_v11 = vrot.slane %v375_v4, 1  ;;  %v365_v13 = vadd.f32 %v352_v52, %v329_v39  ;;  %v366_v16 = vadd.f32 %v354_v53, %v299_v40 }
  0x4f   : > { %471 = vrot.lane.b32.xlu0 %v417_v55, %s950_s28  ;;  %473 = vrot.lane.b32.xlu1 %v418_v59, %s950_s28  ;;  %v398_v14 = vsel %vm385_vm2, %v396_v6, %v397_v7  ;;  %v410_v15 = vadd.f32 %v395_v10, %v364_v9 }
  0x50   : > { %v400_v18 = vsel %vm385_vm2, %v397_v7, %v399_v11  ;;  %v411_v19 = vadd.f32 %v398_v14, %v365_v13 }
  0x51   : > { %v412_v17 = vadd.f32 %v400_v18, %v366_v16 }
  0x53   : > { %425 = vrot.lane.b32.xlu0 %v407_v3, %s950_s28  ;;  %427 = vrot.lane.b32.xlu1 %v408_v8, %s950_s28 }
  0x57   : > { %429 = vrot.lane.b32.xlu0 %v409_v12, %s950_s28  ;;  %431 = vrot.lane.b32.xlu1 %v410_v15, %s950_s28 }
  0x5b   : > { %433 = vrot.lane.b32.xlu0 %v411_v19, %s950_s28  ;;  %435 = vrot.lane.b32.xlu1 %v412_v17, %s950_s28 }
  0xb9   : > { %v464_v20 = vpop.permute.xlu0 %463  ;;  %v468_v23 = vpop.permute.xlu1 %467 }
  0xba   : > { %v481_v21 = vsel %vm443_vm3, 0.0, %v464_v20  ;;  %v483_v24 = vsel %vm443_vm3, 0.0, %v468_v23 }
  0xbb   : > { %v1164_v22 = vsel %vm450_vm4, %v481_v21, 0.0  ;;  %v1170_v25 = vsel %vm450_vm4, %v483_v24, 0.0 }
  0xbc   : > { %529 = vrot.lane.b32.xlu0 %v1164_v22, %s951_s29  ;;  %v553_v56 = vmul.f32 2.0, %v1164_v22  ;;  %v555_v57 = vmul.f32 2.0, %v1170_v25 }
  0xbd   : > { %v466_v26 = vpop.permute.xlu0 %465  ;;  %v470_v29 = vpop.permute.xlu1 %469 }
  0xbe   : > { %v482_v27 = vsel %vm443_vm3, 0.0, %v466_v26  ;;  %v484_v30 = vsel %vm443_vm3, 0.0, %v470_v29 }
  0xbf   : > { %v1174_v28 = vsel %vm450_vm4, %v482_v27, 0.0  ;;  %v1182_v31 = vsel %vm450_vm4, %v484_v30, 0.0 }
  0xc0   : > { %531 = vrot.lane.b32.xlu1 %v1174_v28, %s951_s29  ;;  %533 = vrot.lane.b32.xlu0 %v1170_v25, %s951_s29  ;;  %v554_v58 = vmul.f32 2.0, %v1174_v28  ;;  %v556_v59 = vmul.f32 2.0, %v1182_v31 }
  0xc1   : > { %v472_v32 = vpop.permute.xlu0 %471  ;;  %v474_v35 = vpop.permute.xlu1 %473 }
  0xc2   : > { %v485_v33 = vsel %vm443_vm3, 0.0, %v472_v32  ;;  %v486_v36 = vsel %vm443_vm3, 0.0, %v474_v35 }
  0xc3   : > { %v1186_v34 = vsel %vm450_vm4, %v485_v33, 0.0  ;;  %v1194_v37 = vsel %vm450_vm4, %v486_v36, 0.0 }
  0xc4   : > { %535 = vrot.lane.b32.xlu1 %v1182_v31, %s951_s29  ;;  %537 = vrot.lane.b32.xlu0 %v1186_v34, %s951_s29  ;;  %v557_v60 = vmul.f32 2.0, %v1186_v34  ;;  %v558_v61 = vmul.f32 2.0, %v1194_v37 }
  0xc5   : > { %v426_v38 = vpop.permute.xlu0 %425  ;;  %v428_v41 = vpop.permute.xlu1 %427 }
  0xc6   : > { %v444_v39 = vsel %vm443_vm3, 0.0, %v426_v38  ;;  %v445_v42 = vsel %vm443_vm3, 0.0, %v428_v41 }
  0xc7   : > { %v451_v40 = vsel %vm450_vm4, %v444_v39, 0.0  ;;  %v452_v43 = vsel %vm450_vm4, %v445_v42, 0.0 }
  0xc8   : > { %539 = vrot.lane.b32.xlu1 %v1194_v37, %s951_s29  ;;  %499 = vrot.lane.b32.xlu0 %v451_v40, %s951_s29 }
  0xc9   : > { %v430_v44 = vpop.permute.xlu0 %429  ;;  %v432_v47 = vpop.permute.xlu1 %431 }
  0xca   : > { %v446_v45 = vsel %vm443_vm3, 0.0, %v430_v44  ;;  %v447_v48 = vsel %vm443_vm3, 0.0, %v432_v47 }
  0xcb   : > { %v453_v46 = vsel %vm450_vm4, %v446_v45, 0.0  ;;  %v1209_v49 = vsel %vm450_vm4, %v447_v48, 0.0 }
  0xcc   : > { %501 = vrot.lane.b32.xlu1 %v452_v43, %s951_s29  ;;  %503 = vrot.lane.b32.xlu0 %v453_v46, %s951_s29 }
  0xcd   : > { %v434_v50 = vpop.permute.xlu0 %433  ;;  %v436_v53 = vpop.permute.xlu1 %435 }
  0xce   : > { %v448_v51 = vsel %vm443_vm3, 0.0, %v434_v50  ;;  %v449_v54 = vsel %vm443_vm3, 0.0, %v436_v53 }
  0xcf   : > { %v1213_v52 = vsel %vm450_vm4, %v448_v51, 0.0  ;;  %v1221_v55 = vsel %vm450_vm4, %v449_v54, 0.0 }
  0xd0   : > { %505 = vrot.lane.b32.xlu1 %v1209_v49, %s951_s29  ;;  %507 = vrot.lane.b32.xlu0 %v1213_v52, %s951_s29 }
  0xd4   : > { %509 = vrot.lane.b32.xlu1 %v1221_v55, %s951_s29  ;;  %565 = vrot.lane.b32.xlu0 %v553_v56, %s952_s30 }
  0xd8   : > { %567 = vrot.lane.b32.xlu1 %v554_v58, %s952_s30  ;;  %569 = vrot.lane.b32.xlu0 %v555_v57, %s952_s30 }
  0xdc   : > { %571 = vrot.lane.b32.xlu1 %v556_v59, %s952_s30  ;;  %573 = vrot.lane.b32.xlu0 %v557_v60, %s952_s30 }
  0xe0   : > { %575 = vrot.lane.b32.xlu1 %v558_v61, %s952_s30 }
 0x12e   : > { %v530_v62 = vpop.permute.xlu0 %529 }
 0x12f   : > { %v547_v9 = vadd.f32 %v530_v62, %v1164_v22 }
 0x132   : > { %v532_v63 = vpop.permute.xlu1 %531  ;;  %v534_v0 = vpop.permute.xlu0 %533 }
 0x133   : > { %v548_v14 = vadd.f32 %v532_v63, %v1174_v28  ;;  %v549_v16 = vadd.f32 %v534_v0, %v1170_v25 }
 0x136   : > { %v536_v1 = vpop.permute.xlu1 %535  ;;  %v538_v2 = vpop.permute.xlu0 %537 }
 0x137   : > { %v550_v22 = vadd.f32 %v536_v1, %v1182_v31  ;;  %v551_v27 = vadd.f32 %v538_v2, %v1186_v34 }
 0x13a   : > { %v540_v3 = vpop.permute.xlu1 %539  ;;  %v500_v4 = vpop.permute.xlu0 %499 }
 0x13b   : > { %v517_v10 = vsub.f32 %v451_v40, %v500_v4  ;;  %v552_v40 = vadd.f32 %v540_v3, %v1194_v37 }
 0x13d   : > { %v589_v18 = vand.u32 2147483647, %v517_v10 }
 0x13e   : > { %v502_v5 = vpop.permute.xlu1 %501  ;;  %v504_v6 = vpop.permute.xlu0 %503 }
 0x13f   : > { %v518_v15 = vsub.f32 %v452_v43, %v502_v5  ;;  %v519_v19 = vsub.f32 %v453_v46, %v504_v6 }
 0x141   : > { %v590_v29 = vand.u32 2147483647, %v518_v15  ;;  %v591_v30 = vand.u32 2147483647, %v519_v19 }
 0x142   : > { %v506_v7 = vpop.permute.xlu1 %505  ;;  %v508_v8 = vpop.permute.xlu0 %507 }
 0x143   : > { %v520_v28 = vsub.f32 %v1209_v49, %v506_v7  ;;  %v521_v25 = vsub.f32 %v1213_v52, %v508_v8 }
 0x145   : > { %v592_v41 = vand.u32 2147483647, %v520_v28  ;;  %v593_v42 = vand.u32 2147483647, %v521_v25 }
 0x146   : > { %v510_v11 = vpop.permute.xlu1 %509  ;;  %v566_v12 = vpop.permute.xlu0 %565 }
 0x147   : > { %v583_v13 = vadd.f32 %v566_v12, %v547_v9  ;;  %v522_v43 = vsub.f32 %v1221_v55, %v510_v11 }
 0x149   : > { %v595_v17 = vand.u32 2147483647, %v583_v13  ;;  %v594_v49 = vand.u32 2147483647, %v522_v43 }
 0x14a   : > { %v568_v20 = vpop.permute.xlu1 %567  ;;  %v570_v21 = vpop.permute.xlu0 %569 }
 0x14b   : > { %v601_v23 = vadd.f32 %v595_v17, %v589_v18  ;;  %v584_v24 = vadd.f32 %v568_v20, %v548_v14  ;;  %v585_v26 = vadd.f32 %v570_v21, %v549_v16 }
 0x14d   : > { %608 = vst.msk [vmem:[%s1240_s5] sm:$0xff] %vm607_vm5, %v601_v23  ;;  %v596_v32 = vand.u32 2147483647, %v584_v24  ;;  %v597_v33 = vand.u32 2147483647, %v585_v26 }
 0x14e   : > { %v572_v31 = vpop.permute.xlu1 %571  ;;  %v574_v34 = vpop.permute.xlu0 %573 }
 0x14f   : > { %v602_v35 = vadd.f32 %v596_v32, %v590_v29  ;;  %v603_v36 = vadd.f32 %v597_v33, %v591_v30  ;;  %v586_v38 = vadd.f32 %v572_v31, %v550_v22  ;;  %v587_v39 = vadd.f32 %v574_v34, %v551_v27 }
 0x151   : > { %609 = vst.msk [vmem:[%s1240_s5 + $0x8] sm:$0xff] %vm607_vm5, %v602_v35  ;;  %610 = vst.msk [vmem:[%s1240_s5 + $0x10] sm:$0xff] %vm607_vm5, %v603_v36  ;;  %v598_v44 = vand.u32 2147483647, %v586_v38  ;;  %v599_v45 = vand.u32 2147483647, %v587_v39 }
 0x152   : > { %v576_v46 = vpop.permute.xlu1 %575 }
 0x153   : > { %v604_v47 = vadd.f32 %v598_v44, %v592_v41  ;;  %v605_v48 = vadd.f32 %v599_v45, %v593_v42  ;;  %v588_v37 = vadd.f32 %v576_v46, %v552_v40 }
 0x155   : > { %611 = vst.msk [vmem:[%s1240_s5 + $0x18] sm:$0xff] %vm607_vm5, %v604_v47  ;;  %612 = vst.msk [vmem:[%s1240_s5 + $0x20] sm:$0xff] %vm607_vm5, %v605_v48  ;;  %v600_v50 = vand.u32 2147483647, %v588_v37 }
 0x157   : > { %v606_v51 = vadd.f32 %v600_v50, %v594_v49 }
 0x159   : > { %613 = vst.msk [vmem:[%s1240_s5 + $0x28] sm:$0xff] %vm607_vm5, %v606_v51 }
 0x15a   : > { %876 = shalt.err (!%p873_p6)
}
 0x15b   : > { %s877_s22 = scalar_lea.hbm %s1259_s21, 768  ;;  %s881_s28 = scalar_lea.hbm %s1315_s3, 1536 }
 0x15c   : > { %p878_p7 = scmp.ne.s32.totalorder %s1259_s21, %s877_s22  ;;  %p882_p1 = scmp.lt.u32.totalorder %s1259_s21, %s1315_s3 }
 0x15d   : > { %p883_p3 = scmp.lt.u32.totalorder %s881_s28, %s877_s22  ;;  %p885_p8 = scmp.lt.u32.totalorder %s877_s22, %s1259_s21 }
 0x15e   : > { %p879_p10 = pnand %p878_p7, %p1323_p11 }
 0x15f   : > { %p884_p9 = por %p883_p3, %p882_p1 }
 0x160   : > { %p880_p12 = pneg %p879_p10 }
 0x161   : > { %p886_p0 = por %p885_p8, %p884_p9 }
 0x163   : > { %p887_p5 = pnand %p886_p0, %p880_p12 }
 0x165   : > { %890 = shalt.err (!%p887_p5)
}
 0x166   : > { %s954_s5 = smov 128   ;;  %s955_s6 = smov 8  }
 0x167   : > { %766 = dma.vmem_to_hbm [thread:$0]  (%p1323_p11), %s1261_s8, 768, %s1259_s21, %s615_s15, %s954_s5, %s954_s5, %s955_s6  }
 0x168 PF: > { %s646_s18 = sand.u32 1, %s925_s12   ;;  %p1324_p13 = scmp.ne.s32.totalorder %s1320_s27, 0 }
 0x169   : > { %p1325_p2 = scmp.ge.s32.totalorder %s945_s17, 2  ;;  %s647_s19 = scalar_lea.sflag [#allocation4], %s646_s18 }
 0x16b   : > { %p773_p4 = pnand %p1325_p2, %p1324_p13 }
 0x16d   : > { %920 = dma.done.wait (!%p773_p4), %s647_s19, 768  }
 0x16e   : > { %922 = vsyncadd (!%p773_p4), %s647_s19, 4294966528  ;;  %s19_s17 = sadd.s32 1, %s945_s17   ;;  %s1326_s12 = smov %s929_s13 }
 0x16f   : > { %p16_p6 = scmp.ge.s32.totalorder %s19_s17, 4   ;;  %s1327_s13 = smov %s933_s14 }
 0x170   : > { %s1328_s14 = smov %s1032_s26  ;;  %s1329_s15 = smov %s941_s16 }
 0x171   : > { %s1330_s16 = smov %s1332_s20  ;;  %18 = sbr.rel (!%p16_p6) target bundleno = 6 (0x6), region = 83 }
 0x178   :  { %652 = vsyncpa [#allocation3], 1 }
 0x179   :  { %654 = vsyncpa [#allocation3 + $0x1], 1 }
 0x17a   :  { %655 = vsyncpa [#allocation4], 1 }
 0x17b   :  { %657 = vsyncpa [#allocation4 + $0x1], 1 }

</bundles_post_ra>
